<compile_context>
chip_gen: v7x
topology: tpu7x:2x2x1
jax: 0.10.0
libtpu: 0.0.40
codegen_flags: <defaults>
</compile_context>

<pallas_src>
import functools

import jax
import jax.numpy as jnp
from jax.experimental import pallas as pl
from jax.experimental.pallas import tpu as pltpu


def _sge_kernel(x_ref, w_ref, b_ref, o_ref, *, hw):
    """One block of bt (batch, group) units.

    x_ref : (bt, cg, hw_pad)  input dtype, zero-padded along hw_pad
    w_ref : (bt, 1, 1)        f32 per-unit weight
    b_ref : (bt, 1, 1)        f32 per-unit bias
    o_ref : (bt, cg, hw_pad)  output, same dtype as x

    `hw` is the true (unpadded) spatial size. Padded lanes are zero, so the
    sum-based statistics below are unaffected by padding.
    """
    x = x_ref[...]                       # native dtype; reused for the gating pass
    xf = x.astype(jnp.float32)           # f32 only inside the reductions

    inv_hw = 1.0 / hw
    # AdaptiveAvgPool2d(1): per-channel spatial mean.
    avg = jnp.sum(xf, axis=-1, keepdims=True) * inv_hw           # (bt, cg, 1)
    # Channel-weighted spatial map: xn[p] = sum_ch x[ch, p] * avg[ch].
    xn = jnp.sum(xf * avg, axis=1)                                # (bt, hw_pad)

    # mean_hw(xn) == sum_ch avg[ch]^2  -> avoids a second (bt, hw) lane reduction.
    mean = jnp.sum(avg * avg, axis=1)                             # (bt, 1)
    # Unbiased variance via sum of squares (torch .std default: N-1 divisor).
    sumsq = jnp.sum(xn * xn, axis=-1, keepdims=True)              # (bt, 1)
    # TODO(synk): torch returns NaN for 1x1 spatial inputs (std over 1 elem);
    # we guard the divisor instead of reproducing the NaN.
    inv_nm1 = 1.0 / max(hw - 1, 1)
    var = jnp.maximum((sumsq - hw * mean * mean) * inv_nm1, 0.0)
    std = jnp.sqrt(var) + 1e-5

    # Fold standardization + per-group affine into per-row scale/shift so the
    # only full (bt, hw) passes are one FMA and the sigmoid (no per-element
    # divide). approx=True would push the reciprocal to the EUP (~2^-13 rel
    # err); exact keeps the torch-parity check comfortably inside 1e-4.
    inv_std = pl.reciprocal(std, approx=False)                    # (bt, 1)
    wv = w_ref[...][:, 0, :]                                      # (bt, 1)
    bv = b_ref[...][:, 0, :]                                      # (bt, 1)
    scale = wv * inv_std
    shift = bv - mean * scale
    gate = jax.nn.sigmoid(xn * scale + shift)                     # (bt, hw_pad) f32

    # Gating pass in the input dtype (no extra f32 copy of the x block).
    o_ref[...] = x * gate.astype(x.dtype)[:, None, :]


def _vmem_budget():
    """Return (physical_vmem, scoped vmem_limit_bytes, pipeline footprint budget)."""
    try:
        cap = int(pltpu.get_tpu_info().vmem_capacity_bytes)
    except Exception:
        cap = 128 * 1024 * 1024          # v5e/v6e physical; safe fallback off-TPU
    # Scoped limit: ~3/4 of physical (v5e/v6e -> 96 MiB, v7x -> 48 MiB).
    vmem_limit = min(cap - (2 << 20), (cap * 3) // 4)
    # Our own footprint target (double-buffered in/out + temporaries):
    # ~2/3 of the scoped limit (v6e -> ~64 MiB, v7x -> ~32 MiB).
    return cap, vmem_limit, (vmem_limit * 2) // 3


def _pick_block_units(bg, bytes_per_unit, footprint_budget):
    """Units (batch*group rows) per grid step.

    Picks the largest divisor of bg such that:
      * the estimated VMEM footprint stays under `footprint_budget`,
      * there are >= 8 grid steps when bg allows (>= 4 per TensorCore on a
        2-TC v7x megacore, so prologue/epilogue DMAs stay overlapped),
      * the step count is even when that does not shrink the block > 2x.
    No bt % 8 requirement: the weight/bias blocks are (bt, 1, 1).
    """
    max_bt = max(1, footprint_budget // max(bytes_per_unit, 1))
    if bg >= 8:
        min_steps = 8
    elif bg >= 4:
        min_steps = 4
    else:
        min_steps = bg
    max_bt = max(1, min(max_bt, bg // min_steps))
    divisors = [d for d in range(1, bg + 1) if bg % d == 0 and d <= max_bt]
    best = max(divisors) if divisors else 1
    even = [d for d in divisors if (bg // d) % 2 == 0]
    if even and 2 * max(even) >= best:
        best = max(even)
    return best


def spatial_group_enhance(x, weight, bias, *, groups=8):
    """Pallas equivalent of SpatialGroupEnhance.forward.

    x: (B, C, H, W); weight/bias reshapeable to (groups,) (module: (1, g, 1, 1)).
    """
    b, c, h, w = x.shape
    assert c % groups == 0, "channels must be divisible by groups"
    cg = c // groups
    hw = h * w
    bg = b * groups

    xg = x.reshape(bg, cg, hw)
    # Pad HW to a multiple of 128 so every vreg / store is lane-dense. Zero
    # padding is statistics-neutral because the kernel uses sum-based forms
    # divided by the true hw, and padded outputs are 0*gate = 0 (sliced off).
    hw_pad = ((hw + 127) // 128) * 128
    if hw_pad != hw:
        xg = jnp.pad(xg, ((0, 0), (0, 0), (0, hw_pad - hw)))

    # Per-(batch, group) scalars as (bg, 1, 1): last two dims equal the full
    # array dims, so the leading dim tiles with ANY bt (no (8,128) coupling).
    w_unit = jnp.broadcast_to(weight.reshape(1, groups).astype(jnp.float32),
                              (b, groups)).reshape(bg, 1, 1)
    b_unit = jnp.broadcast_to(bias.reshape(1, groups).astype(jnp.float32),
                              (b, groups)).reshape(bg, 1, 1)

    itemsize = jnp.dtype(x.dtype).itemsize
    # Per-unit VMEM cost estimate: 2x double-buffered input + 2x double-
    # buffered output blocks, ~2 f32-block temporaries (xf, xf*avg pass), and
    # a few (hw,) f32 row temporaries (xn, gate, ...).
    bytes_per_unit = cg * hw_pad * (4 * itemsize + 8) + hw_pad * 16

    cap, vmem_limit, footprint_budget = _vmem_budget()
    bt = _pick_block_units(bg, bytes_per_unit, footprint_budget)
    # If even bt == 1 exceeds the default budget, raise the scoped limit
    # (bounded by physical VMEM minus headroom).
    needed = bt * bytes_per_unit + (4 << 20)
    if needed > vmem_limit:
        vmem_limit = min(cap - (2 << 20), needed)

    grid = (bg // bt,)
    kernel = functools.partial(_sge_kernel, hw=hw)

    out = pl.pallas_call(
        kernel,
        out_shape=jax.ShapeDtypeStruct((bg, cg, hw_pad), x.dtype),
        grid=grid,
        in_specs=[
            pl.BlockSpec((bt, cg, hw_pad), lambda i: (i, 0, 0)),
            pl.BlockSpec((bt, 1, 1), lambda i: (i, 0, 0)),
            pl.BlockSpec((bt, 1, 1), lambda i: (i, 0, 0)),
        ],
        out_specs=pl.BlockSpec((bt, cg, hw_pad), lambda i: (i, 0, 0)),
        compiler_params=pltpu.CompilerParams(
            dimension_semantics=("parallel",),
            vmem_limit_bytes=int(vmem_limit)),
    )(xg, w_unit, b_unit)

    if hw_pad != hw:
        out = out[:, :, :hw]
    return out.reshape(b, c, h, w)


def _reference(x, weight, bias, *, groups=8):
    b, c, h, w = x.shape
    g = groups
    xg = x.reshape(b * g, c // g, h, w)
    avg = jnp.mean(xg, axis=(2, 3), keepdims=True)
    xn = jnp.sum(xg * avg, axis=1, keepdims=True)
    t = xn.reshape(b * g, -1)
    t = t - jnp.mean(t, axis=1, keepdims=True)
    std = jnp.std(t, axis=1, keepdims=True, ddof=1) + 1e-5
    t = t / std
    t = t.reshape(b, g, h, w)
    t = t * weight.reshape(1, g, 1, 1) + bias.reshape(1, g, 1, 1)
    t = t.reshape(b * g, 1, h, w)
    out = xg * jax.nn.sigmoid(t)
    return out.reshape(b, c, h, w)


if __name__ == "__main__":
    # Small NCHW shapes consistent with the module (C divisible by groups=8).
    b, c, h, w = 2, 32, 16, 16
    groups = 8

    key = jax.random.PRNGKey(0)
    kx, kw, kb = jax.random.split(key, 3)
    x = jax.random.normal(kx, (b, c, h, w), dtype=jnp.float32)
    # Module init is zeros (gate trivially 0.5); use small random values for a
    # meaningful correctness check of the same math.
    weight = 0.5 * jax.random.normal(kw, (1, groups, 1, 1), dtype=jnp.float32)
    bias = 0.5 * jax.random.normal(kb, (1, groups, 1, 1), dtype=jnp.float32)

    out = spatial_group_enhance(x, weight, bias, groups=groups)
    jax.block_until_ready(out)

    ref = _reference(x, weight, bias, groups=groups)
    assert out.shape == (b, c, h, w)
    assert jnp.allclose(out, ref, atol=1e-4, rtol=1e-4), (
        float(jnp.max(jnp.abs(out - ref))))

    print("KERNEL_OK")
</pallas_src>

<mosaic_0001>
module attributes {stable_mosaic.version = 11 : i64} {
  func.func @_sge_kernel(%arg0: i32, %arg1: memref<2x4x256xf32, #tpu.memory_space<vmem>>, %arg2: memref<2x1x1xf32, #tpu.memory_space<vmem>>, %arg3: memref<2x1x1xf32, #tpu.memory_space<vmem>>, %arg4: memref<2x4x256xf32, #tpu.memory_space<vmem>>) attributes {dimension_semantics = [#tpu.dimension_semantics<parallel>], iteration_bounds = array<i64: 8>, scalar_prefetch = 0 : i64, scratch_operands = 0 : i64, tpu.core_type = #tpu.core_type<tc>, window_params = [{transform_indices = @transform_0, window_bounds = array<i64: 2, 4, 256>}, {transform_indices = @transform_1, window_bounds = array<i64: 2, 1, 1>}, {transform_indices = @transform_2, window_bounds = array<i64: 2, 1, 1>}, {transform_indices = @transform_3, window_bounds = array<i64: 2, 4, 256>}]} {
    %c0 = arith.constant 0 : index
    %c0_0 = arith.constant 0 : index
    %c0_1 = arith.constant 0 : index
    %0 = vector.load %arg1[%c0, %c0_0, %c0_1] : memref<2x4x256xf32, #tpu.memory_space<vmem>>, vector<2x4x256xf32>
    %cst = arith.constant dense<0.000000e+00> : vector<2x4xf32>
    %1 = vector.multi_reduction <add>, %0, %cst [2] : vector<2x4x256xf32> to vector<2x4xf32>
    %2 = vector.shape_cast %1 : vector<2x4xf32> to vector<2x4x1xf32>
    %cst_2 = arith.constant 3.906250e-03 : f32
    %3 = vector.broadcast %cst_2 : f32 to vector<2x4x1xf32>
    %4 = arith.mulf %2, %3 : vector<2x4x1xf32>
    %5 = vector.broadcast %4 : vector<2x4x1xf32> to vector<2x4x256xf32>
    %6 = arith.mulf %0, %5 : vector<2x4x256xf32>
    %cst_3 = arith.constant dense<0.000000e+00> : vector<2x256xf32>
    %7 = vector.multi_reduction <add>, %6, %cst_3 [1] : vector<2x4x256xf32> to vector<2x256xf32>
    %8 = arith.mulf %4, %4 : vector<2x4x1xf32>
    %cst_4 = arith.constant dense<0.000000e+00> : vector<2x1xf32>
    %9 = vector.multi_reduction <add>, %8, %cst_4 [1] : vector<2x4x1xf32> to vector<2x1xf32>
    %10 = arith.mulf %7, %7 : vector<2x256xf32>
    %cst_5 = arith.constant dense<0.000000e+00> : vector<2xf32>
    %11 = vector.multi_reduction <add>, %10, %cst_5 [1] : vector<2x256xf32> to vector<2xf32>
    %12 = vector.shape_cast %11 : vector<2xf32> to vector<2x1xf32>
    %cst_6 = arith.constant 2.560000e+02 : f32
    %13 = vector.broadcast %cst_6 : f32 to vector<2x1xf32>
    %14 = arith.mulf %13, %9 : vector<2x1xf32>
    %15 = arith.mulf %14, %9 : vector<2x1xf32>
    %16 = arith.subf %12, %15 : vector<2x1xf32>
    %cst_7 = arith.constant 0.00392156886 : f32
    %17 = vector.broadcast %cst_7 : f32 to vector<2x1xf32>
    %18 = arith.mulf %16, %17 : vector<2x1xf32>
    %cst_8 = arith.constant 0.000000e+00 : f32
    %19 = vector.broadcast %cst_8 : f32 to vector<2x1xf32>
    %20 = arith.maximumf %18, %19 : vector<2x1xf32>
    %21 = math.sqrt %20 : vector<2x1xf32>
    %cst_9 = arith.constant 9.99999974E-6 : f32
    %22 = vector.broadcast %cst_9 : f32 to vector<2x1xf32>
    %23 = arith.addf %21, %22 : vector<2x1xf32>
    %24 = tpu.reciprocal %23 : vector<2x1xf32> -> vector<2x1xf32>
    %c0_10 = arith.constant 0 : index
    %c0_11 = arith.constant 0 : index
    %c0_12 = arith.constant 0 : index
    %25 = vector.load %arg2[%c0_10, %c0_11, %c0_12] : memref<2x1x1xf32, #tpu.memory_space<vmem>>, vector<2x1x1xf32>
    %26 = vector.shape_cast %25 : vector<2x1x1xf32> to vector<2x1xf32>
    %c0_13 = arith.constant 0 : index
    %c0_14 = arith.constant 0 : index
    %c0_15 = arith.constant 0 : index
    %27 = vector.load %arg3[%c0_13, %c0_14, %c0_15] : memref<2x1x1xf32, #tpu.memory_space<vmem>>, vector<2x1x1xf32>
    %28 = vector.shape_cast %27 : vector<2x1x1xf32> to vector<2x1xf32>
    %29 = arith.mulf %26, %24 : vector<2x1xf32>
    %30 = arith.mulf %9, %29 : vector<2x1xf32>
    %31 = arith.subf %28, %30 : vector<2x1xf32>
    %32 = vector.broadcast %29 : vector<2x1xf32> to vector<2x256xf32>
    %33 = arith.mulf %7, %32 : vector<2x256xf32>
    %34 = vector.broadcast %31 : vector<2x1xf32> to vector<2x256xf32>
    %35 = arith.addf %33, %34 : vector<2x256xf32>
    %36 = arith.negf %35 : vector<2x256xf32>
    %37 = math.exp %36 : vector<2x256xf32>
    %cst_16 = arith.constant 1.000000e+00 : f32
    %38 = vector.broadcast %cst_16 : f32 to vector<2x256xf32>
    %39 = arith.addf %38, %37 : vector<2x256xf32>
    %40 = arith.divf %38, %39 : vector<2x256xf32>
    %41 = vector.shape_cast %40 : vector<2x256xf32> to vector<2x1x256xf32>
    %42 = vector.broadcast %41 : vector<2x1x256xf32> to vector<2x4x256xf32>
    %43 = arith.mulf %0, %42 : vector<2x4x256xf32>
    %c0_17 = arith.constant 0 : index
    %c0_18 = arith.constant 0 : index
    %c0_19 = arith.constant 0 : index
    %44 = vector.load %arg4[%c0_17, %c0_18, %c0_19] : memref<2x4x256xf32, #tpu.memory_space<vmem>>, vector<2x4x256xf32>
    tpu.vector_store %arg4[%c0_17, %c0_18, %c0_19], %43 {strides = array<i32>} : memref<2x4x256xf32, #tpu.memory_space<vmem>>, vector<2x4x256xf32>,
    return
  }
  func.func @transform_0(%arg0: i32) -> (i32, i32, i32) {
    %c0_i32 = arith.constant 0 : i32
    %c0_i32_0 = arith.constant 0 : i32
    %c0_i32_1 = arith.constant 0 : i32
    return %arg0, %c0_i32, %c0_i32_0 : i32, i32, i32
  }
  func.func @transform_1(%arg0: i32) -> (i32, i32, i32) {
    %c0_i32 = arith.constant 0 : i32
    %c0_i32_0 = arith.constant 0 : i32
    %c0_i32_1 = arith.constant 0 : i32
    return %arg0, %c0_i32, %c0_i32_0 : i32, i32, i32
  }
  func.func @transform_2(%arg0: i32) -> (i32, i32, i32) {
    %c0_i32 = arith.constant 0 : i32
    %c0_i32_0 = arith.constant 0 : i32
    %c0_i32_1 = arith.constant 0 : i32
    return %arg0, %c0_i32, %c0_i32_0 : i32, i32, i32
  }
  func.func @transform_3(%arg0: i32) -> (i32, i32, i32) {
    %c0_i32 = arith.constant 0 : i32
    %c0_i32_0 = arith.constant 0 : i32
    %c0_i32_1 = arith.constant 0 : i32
    return %arg0, %c0_i32, %c0_i32_0 : i32, i32, i32
  }
}

</mosaic_0001>

<bundles_post_ra>
// kernel: tpu_custom_call.1
= control target key start
LH: loop header
LB: loop body
LE: loop exit
PB: predicated region body
PF: predicated region fallthrough
CT: control target
= control target key end

     0   :  { %s1295_s0 = inlined_call_operand.hbm [shape: f32[16,4,256], index: 0, kind: input, shape index: {}]   ;;  %s1296_s1 = inlined_call_operand.hbm [shape: f32[16,1,1], index: 1, kind: input, shape index: {}]   ;;  %s1297_s2 = inlined_call_operand.hbm [shape: f32[16,1,1], index: 2, kind: input, shape index: {}]   ;;  %s1298_s3 = inlined_call_operand.hbm [shape: f32[16,4,256], index: 3, kind: output, shape index: {}]  }
   0x1   :  { %1303 = sst [smem:[#allocation12_spill]] %s1296_s1 }
   0x2   :  { %8 = vsyncpa [#allocation3], 0 }
   0x3   :  { %10 = vsyncpa [#allocation3 + $0x1], 0 }
   0x4   :  { %11 = vsyncpa [#allocation6], 0 }
   0x5   :  { %13 = vsyncpa [#allocation6 + $0x1], 0 }
   0x6   :  { %14 = vsyncpa [#allocation4], 0 }
   0x7   :  { %16 = vsyncpa [#allocation4 + $0x1], 0  ;;  %s981_s12 = smov 0   ;;  %s983_s13 = smov 0  }
   0x8   :  { %s985_s14 = smov 0   ;;  %s987_s15 = smov 0  }
   0x9 LB: > { %s1002_s16 = sadd.s32 4294967295, %s946_s15   ;;  %s663_s17 = sadd.s32 4294967294, %s946_s15   ;;  %s946_s15 = sphi %s987_s15, %s1320_s15   ;;  %s942_s14 = sphi %s985_s14, %s1319_s14   ;;  %s938_s13 = sphi %s983_s13, %s1318_s13   ;;  %s934_s12 = sphi %s981_s12, %s1317_s12  }
   0xa   : > { %s1006_s18 = sadd.s32 1, %s946_s15   ;;  %s29_s19 = sadd.s32 1, %s942_s14 }
   0xb   : > { %s26_s20 = ssub.s32 %s946_s15, %s1006_s18  ;;  %p36_p0 = scmp.ne.s32.totalorder %s942_s14, %s938_s13 }
   0xc   : > { %p27_p1 = scmp.eq.s32.totalorder %s26_s20, 0  ;;  %p37_p2 = scmp.eq.s32.totalorder %s946_s15, 0 }
   0xd   : > { %p42_p3 = scmp.ne.s32.totalorder %s938_s13, %s934_s12  ;;  %p43_p4 = scmp.eq.s32.totalorder %s1002_s16, 0 }
   0xe   : > { %s1018_s21 = scalar_select %p27_p1, %s942_s14, %s29_s19  }
   0xf   : > { %p38_p5 = por %p37_p2, %p36_p0  ;;  %p1020_p6 = por %p43_p4, %p42_p3 }
  0x10   : > { %p118_p7 = scmp.eq.s32.totalorder %s1002_s16, 7  ;;  %p124_p8 = scmp.eq.s32.totalorder %s663_s17, 7 }
  0x11   : > { %s1304_s22 = scalar_select %p1020_p6, 1, 0 }
  0x12   : > { %p719_p9 = scmp.lt.s32.totalorder %s946_s15, 8  ;;  %p1026_p10 = por %p118_p7, %p36_p0 }
  0x13   : > { %p1030_p11 = por %p124_p8, %p42_p3  ;;  %s1035_s25 = sand.u32 1, %s942_s14  }
  0x14   : > { %s1305_s23 = scalar_select %p1026_p10, 1, 0 }
  0x15   : > { %s1306_s24 = scalar_select %p1030_p11, 1, 0 }
  0x16   : > { %p1037_p12 = pnand %p719_p9, %p38_p5  ;;  %s166_s27 = sand.u32 1, %s946_s15  }
  0x17   : > { %s670_s28 = sshll.u32 %s1035_s25, 1  ;;  %s693_s29 = sshll.u32 %s946_s15, 5 }
  0x18   : > { %s1308_s1 = sld [smem:[#allocation12_spill]]  ;;  %s170_s6 = scalar_lea.vmem [#allocation5], %s670_s28 }
  0x19   : > { %s177_s7 = sshll.u32 %s170_s6, 4  ;;  %s1055_s8 = scalar_lea.sflag [#allocation6], %s166_s27  ;;  %s1053_s7 = int_to_ptr.vmem [resolvable:$true] %s177_s7 }
  0x1a   : > { %p1061_p0 = pneg %p1037_p12 }
  0x1e   : > { %s1049_s5 = scalar_lea.hbm %s1308_s1, %s693_s29  ;;  %s791_s19 = scalar_lea.hbm %s1308_s1, 256 }
  0x1f   : > { %s786_s9 = scalar_lea.hbm %s1049_s5, 32  ;;  %p792_p3 = scmp.lt.u32.totalorder %s1049_s5, %s1308_s1 }
  0x20   : > { %p787_p13 = scmp.ne.s32.totalorder %s1049_s5, %s786_s9  ;;  %p793_p4 = scmp.lt.u32.totalorder %s791_s19, %s786_s9 }
  0x21   : > { %p795_p7 = scmp.lt.u32.totalorder %s786_s9, %s1049_s5 }
  0x22   : > { %p789_p1 = pnand %p1061_p0, %p787_p13  ;;  %p794_p5 = por %p793_p4, %p792_p3 }
  0x24   : > { %p790_p2 = pneg %p789_p1  ;;  %p796_p8 = por %p795_p7, %p794_p5 }
  0x26   : > { %p797_p9 = pnand %p796_p8, %p790_p2 }
  0x28   : > { %800 = shalt.err (!%p797_p9)
}
  0x29   : > { %s801_s27 = scalar_lea.vmem %s1053_s7, 32  ;;  %s948_s4 = smov [#allocation5]  }
  0x2a   : > { %p802_p13 = scmp.ne.s32.totalorder %s1053_s7, %s801_s27  ;;  %s806_s6 = sshll.u32 %s948_s4, 4  ;;  %s807_s6 = int_to_ptr.vmem [resolvable:$false] %s806_s6 }
  0x2b   : > { %s808_s11 = scalar_lea.vmem %s807_s6, 64  ;;  %p809_p10 = scmp.lt.s32.totalorder %s1053_s7, %s807_s6 }
  0x2c   : > { %p804_p1 = pnand %p802_p13, %p1061_p0  ;;  %p810_p6 = scmp.lt.s32.totalorder %s808_s11, %s801_s27 }
  0x2e   : > { %p805_p11 = pneg %p804_p1  ;;  %p811_p3 = por %p810_p6, %p809_p10 }
  0x30   : > { %p812_p4 = pnand %p811_p3, %p805_p11 }
  0x32   : > { %815 = shalt.err (!%p812_p4)
}
  0x33   : > { %s1301_s9 = smov 16   ;;  %s1302_s17 = smov 1  }
  0x34   : > { %711 = dma.hbm_to_vmem [thread:$0]  (!%p1037_p12), %s1049_s5, 32, %s1053_s7, %s1055_s8, %s1301_s9, %s1301_s9, %s1302_s17  }
  0x35   : > { %s1093_s30 = scalar_lea.hbm %s1297_s2, %s693_s29  ;;  %s191_s27 = scalar_lea.vmem [#allocation7], %s670_s28 }
  0x36   : > { %s198_s4 = sshll.u32 %s191_s27, 4  ;;  %p676_p6 = scmp.ge.s32.totalorder %s946_s15, 1  ;;  %s1097_s4 = int_to_ptr.vmem [resolvable:$true] %s198_s4 }
  0x37   : > { %p206_p10 = scmp.lt.s32.totalorder %s946_s15, 9  ;;  %s666_s6 = sshll.u32 %s1035_s25, 4 }
  0x38   : > { %s692_s11 = sshll.u32 %s946_s15, 8  ;;  %s148_s28 = scalar_lea.vmem [#allocation2], %s666_s6 }
  0x39   : > { %p1103_p11 = pnand %p676_p6, %p206_p10  ;;  %s1110_s19 = scalar_lea.hbm %s1295_s0, %s692_s11 }
  0x3a   : > { %s156_s29 = sshll.u32 %s148_s28, 4  ;;  %s145_s20 = scalar_lea.sflag [#allocation3], %s1035_s25  ;;  %s1112_s29 = int_to_ptr.vmem [resolvable:$true] %s156_s29 }
  0x3b   : > { %s1310_s1 = scalar_select %p1103_p11, 1, 0 }
  0x3c   : > { %s816_s27 = scalar_lea.hbm %s1110_s19, 256  ;;  %s821_s5 = scalar_lea.hbm %s1295_s0, 2048 }
  0x3d   : > { %p817_p2 = scmp.ne.s32.totalorder %s1110_s19, %s816_s27  ;;  %p822_p8 = scmp.lt.u32.totalorder %s1110_s19, %s1295_s0 }
  0x3e   : > { %p823_p9 = scmp.lt.u32.totalorder %s821_s5, %s816_s27  ;;  %p825_p1 = scmp.lt.u32.totalorder %s816_s27, %s1110_s19 }
  0x3f   : > { %p819_p5 = pnand %p817_p2, %p1061_p0 }
  0x40   : > { %p824_p13 = por %p823_p9, %p822_p8 }
  0x41   : > { %p820_p7 = pneg %p819_p5 }
  0x42   : > { %p826_p3 = por %p825_p1, %p824_p13 }
  0x44   : > { %p827_p4 = pnand %p826_p3, %p820_p7 }
  0x46   : > { %830 = shalt.err (!%p827_p4)
}
  0x47   : > { %s831_s6 = scalar_lea.vmem %s1112_s29, 256  ;;  %s951_s9 = smov [#allocation2]  }
  0x48   : > { %p832_p6 = scmp.ne.s32.totalorder %s1112_s29, %s831_s6  ;;  %s836_s17 = sshll.u32 %s951_s9, 4  ;;  %s837_s17 = int_to_ptr.vmem [resolvable:$false] %s836_s17 }
  0x49   : > { %s838_s28 = scalar_lea.vmem %s837_s17, 512  ;;  %p839_p5 = scmp.lt.s32.totalorder %s1112_s29, %s837_s17 }
  0x4a   : > { %p834_p10 = pnand %p832_p6, %p1061_p0  ;;  %p840_p11 = scmp.lt.s32.totalorder %s838_s28, %s831_s6 }
  0x4c   : > { %p835_p2 = pneg %p834_p10  ;;  %p841_p8 = por %p840_p11, %p839_p5 }
  0x4e   : > { %p842_p9 = pnand %p841_p8, %p835_p2 }
  0x50   : > { %845 = shalt.err (!%p842_p9)
}
  0x51   : > { %s952_s27 = smov 128   ;;  %s953_s5 = smov 8  }
  0x52   : > { %708 = dma.hbm_to_vmem [thread:$0]  (!%p1037_p12), %s1110_s19, 256, %s1112_s29, %s145_s20, %s952_s27, %s952_s27, %s953_s5  }
  0x53   : > { %s846_s11 = scalar_lea.hbm %s1093_s30, 32  ;;  %s851_s9 = scalar_lea.hbm %s1297_s2, 256 }
  0x54   : > { %p847_p7 = scmp.ne.s32.totalorder %s1093_s30, %s846_s11  ;;  %p852_p1 = scmp.lt.u32.totalorder %s1093_s30, %s1297_s2 }
  0x55   : > { %p853_p3 = scmp.lt.u32.totalorder %s851_s9, %s846_s11  ;;  %p855_p6 = scmp.lt.u32.totalorder %s846_s11, %s1093_s30 }
  0x56   : > { %p849_p11 = pnand %p847_p7, %p1061_p0 }
  0x57   : > { %p854_p4 = por %p853_p3, %p852_p1 }
  0x58   : > { %p850_p13 = pneg %p849_p11 }
  0x59   : > { %p856_p10 = por %p855_p6, %p854_p4 }
  0x5b   : > { %p857_p2 = pnand %p856_p10, %p850_p13 }
  0x5d   : > { %860 = shalt.err (!%p857_p2)
}
  0x5e   : > { %s861_s25 = scalar_lea.vmem %s1097_s4, 32  ;;  %s954_s19 = smov [#allocation7]  }
  0x5f   : > { %p862_p5 = scmp.ne.s32.totalorder %s1097_s4, %s861_s25  ;;  %s866_s29 = sshll.u32 %s954_s19, 4  ;;  %s867_s29 = int_to_ptr.vmem [resolvable:$false] %s866_s29 }
  0x60   : > { %s868_s20 = scalar_lea.vmem %s867_s29, 64  ;;  %p869_p7 = scmp.lt.s32.totalorder %s1097_s4, %s867_s29 }
  0x61   : > { %p864_p8 = pnand %p862_p5, %p1061_p0  ;;  %p870_p11 = scmp.lt.s32.totalorder %s868_s20, %s861_s25 }
  0x63   : > { %p865_p9 = pneg %p864_p8  ;;  %p871_p1 = por %p870_p11, %p869_p7 }
  0x65   : > { %p872_p3 = pnand %p871_p1, %p865_p9 }
  0x67   : > { %875 = shalt.err (!%p872_p3)
}
  0x68   : > { %s1311_s27 = smov 1   ;;  %s1312_s5 = smov 16  }
  0x69   : > { %714 = dma.hbm_to_vmem [thread:$0]  (!%p1037_p12), %s1093_s30, 32, %s1097_s4, %s1055_s8, %s1312_s5, %s1312_s5, %s1311_s27  }
  0x6a   : > { %p1313_p0 = scmp.ne.s32.totalorder %s1310_s1, 0 }
  0x6b   : > { %s1166_s10 = sand.u32 (!%p1313_p0), 1, %s938_s13   ;;  %p1314_p13 = scmp.ne.s32.totalorder (!%p1313_p0), %s1304_s22, 0 }
  0x6c   : > { %210 = sbr.rel (%p1313_p0) target bundleno = 669 (0x29d), region = 32  ;;  %s677_s11 = sshll.u32 (!%p1313_p0), %s1166_s10, 4 }
  0x6d   : > { %s213_s7 = scalar_lea.sflag (!%p1313_p0), [#allocation3], %s1166_s10  ;;  %s216_s26 = scalar_lea.vmem (!%p1313_p0), [#allocation2], %s677_s11 }
  0x73   : > { %921 = dma.done.wait (%p1314_p13), %s213_s7, 256  }
  0x74   : > { %923 = vsyncadd (%p1314_p13), %s213_s7, 4294967040  ;;  %s221_s1 = sand.u32 1, %s1002_s16   ;;  %s678_s8 = sshll.u32 %s1166_s10, 1 }
  0x75   : > { %s222_s30 = scalar_lea.sflag [#allocation6], %s221_s1  ;;  %s1180_s4 = scalar_lea.vmem [#allocation5], %s678_s8 }
  0x76   : > { %925 = dma.done.wait (%p1314_p13), %s222_s30, 64  }
  0x77   : > { %927 = vsyncadd (%p1314_p13), %s222_s30, 4294967232  ;;  %vm279_vm0 = vcmask 1043456   ;;  %v1186_v0 = vld [vmem:[%s216_s26] sm:$0xff]  ;;  %v1188_v1 = vld [vmem:[%s216_s26 + $0x8] sm:$0xff]  ;;  %v955_v10 = vmov 839922192   ;;  %v297_v12 = vlaneseq }
  0x78   : > { %v275_v2 = vcombine.high %v1186_v0, %v1186_v0  ;;  %v280_v3 = vsel %vm279_vm0, %v1186_v0, 0.0  ;;  %v276_v4 = vcombine.high %v1188_v1, %v1188_v1  ;;  %v285_v6 = vsel %vm279_vm0, %v1188_v1, 0.0  ;;  %s234_s22 = scalar_lea.vmem [#allocation7], %s678_s8  ;;  %s696_s6 = sshll.u32 %s1002_s16, 8 }
  0x79   : > { %v295_v11 = vunpack.c.l.s4 %v955_v10  ;;  %v1200_v14 = vshrl.u32 %v297_v12, 7  ;;  %vm370_vm1 = vcmask 1041409   ;;  %vm375_vm2 = vcmask 1041408   ;;  %s266_s9 = scalar_lea.vmem [#allocation8], %s677_s11  ;;  %s1249_s19 = scalar_lea.hbm %s1298_s3, %s696_s6 }
  0x7a   : > { %v281_v5 = vsel %vm279_vm0, %v275_v2, 0.0  ;;  %v286_v7 = vsel %vm279_vm0, %v276_v4, 0.0  ;;  %s547_s17 = sshll.u32 %s266_s9, 4  ;;  %s533_s29 = scalar_lea.sflag [#allocation4], %s1166_s10  ;;  %s1251_s17 = int_to_ptr.vmem [resolvable:$true] %s547_s17 }
  0x7b   : > { %v282_v8 = vadd.f32 %v281_v5, %v280_v3  ;;  %v287_v9 = vadd.f32 %v286_v7, %v285_v6  ;;  %v296_v13 = vunpack.c.0.s8 %v295_v11  ;;  %s876_s16 = scalar_lea.vmem %s1251_s17, 256  ;;  %p1315_p4 = scmp.ne.s32.totalorder %s1305_s23, 0 }
  0x7c   : > { %p877_p12 = scmp.ne.s32.totalorder %s1251_s17, %s876_s16  ;;  %s958_s20 = smov [#allocation8]  }
  0x7d   : > { %283 = vadd.xlane.f32.xlu0 %v282_v8  ;;  %v299_v15 = vsub.s32 %v296_v13, %v1200_v14  ;;  %s880_s27 = sshll.u32 %s958_s20, 4  ;;  %s881_s27 = int_to_ptr.vmem [resolvable:$false] %s880_s27 }
  0x7e   : > { %p878_p6 = pnand %p877_p12, %p1315_p4  ;;  %s882_s5 = scalar_lea.vmem %s881_s27, 512 }
  0x7f   : > { %p883_p2 = scmp.lt.s32.totalorder %s1251_s17, %s881_s27  ;;  %p884_p5 = scmp.lt.s32.totalorder %s882_s5, %s876_s16 }
  0x80   : > { %p879_p10 = pneg %p878_p6 }
  0x81   : > { %288 = vadd.xlane.f32.xlu0 %v287_v9  ;;  %p885_p8 = por %p884_p5, %p883_p2 }
  0x83   : > { %p886_p9 = pnand %p885_p8, %p879_p10 }
 0x10a   : > { %v284_v16 = vpop.xlane.xlu0 %283 }
 0x10b   : > { %v290_v17 = vmul.f32 0.00390625, %v284_v16 }
 0x10d   : > { %v300_v18 = vrot.slane %v290_v17, %v299_v15  ;;  %v346_v19 = vmul.f32 %v290_v17, %v290_v17 }
 0x10e   : > { %v289_v20 = vpop.xlane.xlu0 %288 }
 0x10f   : > { %v310_v21 = vmul.f32 %v300_v18, %v1186_v0  ;;  %v348_v22 = vsel %vm279_vm0, %v346_v19, 0.0  ;;  %v291_v23 = vmul.f32 0.00390625, %v289_v20 }
 0x110   : > { %v349_v24 = vrot.slane %v348_v22, 4 }
 0x111   : > { %v314_v25 = vcombine.high %v310_v21, %v310_v21  ;;  %v318_v26 = vsel %vm279_vm0, %v310_v21, 0.0  ;;  %v307_v27 = vrot.slane %v291_v23, %v299_v15  ;;  %v347_v28 = vmul.f32 %v291_v23, %v291_v23 }
 0x112   : > { %v319_v29 = vrot.slane %v318_v26, 4  ;;  %v350_v30 = vadd.f32 %v349_v24, %v348_v22  ;;  %v956_v23 = vmov 0  }
 0x113   : > { %v325_v31 = vsel %vm279_vm0, %v314_v25, 0.0  ;;  %v311_v32 = vmul.f32 %v307_v27, %v1188_v1  ;;  %v355_v33 = vsel %vm279_vm0, %v347_v28, 0.0  ;;  %762 = vset.pattern.permute.xlu1 %v956_v23  ;;  %763 = vset.pattern.permute.xlu0 %v956_v23 }
 0x114   : > { %v320_v34 = vadd.f32 %v319_v29, %v318_v26  ;;  %v326_v35 = vrot.slane %v325_v31, 4  ;;  %v351_v36 = vrot.slane %v350_v30, 2  ;;  %v356_v37 = vrot.slane %v355_v33, 4 }
 0x115   : > { %v315_v38 = vcombine.high %v311_v32, %v311_v32  ;;  %v332_v39 = vsel %vm279_vm0, %v311_v32, 0.0 }
 0x116   : > { %v321_v40 = vrot.slane %v320_v34, 2  ;;  %v327_v41 = vadd.f32 %v326_v35, %v325_v31  ;;  %v352_v42 = vadd.f32 %v351_v36, %v350_v30  ;;  %v333_v43 = vrot.slane %v332_v39, 4 }
 0x117   : > { %v339_v44 = vsel %vm279_vm0, %v315_v38, 0.0  ;;  %v357_v45 = vadd.f32 %v356_v37, %v355_v33 }
 0x118   : > { %v322_v46 = vadd.f32 %v321_v40, %v320_v34  ;;  %v328_v47 = vrot.slane %v327_v41, 2  ;;  %v353_v48 = vrot.slane %v352_v42, 1  ;;  %v334_v49 = vadd.f32 %v333_v43, %v332_v39  ;;  %v401_v40 = vld [vmem:[%s1180_s4] sm:$0x1]  ;;  %v402_v43 = vld [vmem:[%s1180_s4 + $0x1] sm:$0x1] }
 0x119   : > { %v340_v50 = vrot.slane %v339_v44, 4  ;;  %v358_v51 = vrot.slane %v357_v45, 2  ;;  %v957_v34 = vmov 1966171168  }
 0x11a   : > { %v335_v52 = vrot.slane %v334_v49, 2  ;;  %v329_v53 = vadd.f32 %v328_v47, %v327_v41  ;;  %v1211_v54 = vadd.f32 %v353_v48, %v352_v42  ;;  %v323_v57 = vrot.slane %v322_v46, 1 }
 0x11b   : > { %v341_v55 = vadd.f32 %v340_v50, %v339_v44  ;;  %v359_v56 = vadd.f32 %v358_v51, %v357_v45  ;;  %v407_v35 = vunpack.c.l.s4 %v957_v34  ;;  %v404_v51 = vld [vmem:[%s234_s22 + $0x1] sm:$0x1] }
 0x11c   : > { %v336_v58 = vadd.f32 %v335_v52, %v334_v49  ;;  %v330_v61 = vrot.slane %v329_v53, 1  ;;  %v1213_v2 = vadd.f32 %v323_v57, %v322_v46  ;;  %v381_v4 = vmul.f32 256.0, %v1211_v54  ;;  %v403_v46 = vld [vmem:[%s234_s22] sm:$0x1] }
 0x11d   : > { %v342_v59 = vrot.slane %v341_v55, 2  ;;  %v360_v60 = vrot.slane %v359_v56, 1  ;;  %v408_v36 = vunpack.c.0.s8 %v407_v35 }
 0x11e   : > { %v337_v62 = vrot.slane %v336_v58, 1  ;;  %v1218_v6 = vadd.f32 %v330_v61, %v329_v53  ;;  %v362_v11 = vmul.f32 %v1213_v2, %v1213_v2  ;;  %v383_v12 = vmul.f32 %v381_v4, %v1211_v54 }
 0x11f   : > { %v361_v63 = vadd.f32 %v360_v60, %v359_v56  ;;  %v343_v3 = vadd.f32 %v342_v59, %v341_v55  ;;  %v411_v37 = vsub.s32 %v408_v36, %v1200_v14  ;;  %v443_v53 = vsub.s32 0, %v1200_v14 }
 0x120   : > { %v1216_v5 = vadd.f32 %v337_v62, %v336_v58  ;;  %v363_v15 = vmul.f32 %v1218_v6, %v1218_v6 }
 0x121   : > { %v344_v7 = vrot.slane %v343_v3, 1  ;;  %v382_v8 = vmul.f32 256.0, %v361_v63 }
 0x122   : > { %v364_v9 = vmul.f32 %v1216_v5, %v1216_v5 }
 0x123   : > { %v1222_v10 = vadd.f32 %v344_v7, %v343_v3  ;;  %v384_v13 = vmul.f32 %v382_v8, %v361_v63 }
 0x124   : > { %v371_v17 = vsel %vm370_vm1, %v364_v9, %v362_v11 }
 0x125   : > { %v365_v16 = vmul.f32 %v1222_v10, %v1222_v10  ;;  %v387_v18 = vsel %vm370_vm1, %v384_v13, %v383_v12  ;;  %v376_v20 = vsel %vm375_vm2, %v371_v17, 0.0 }
 0x127   : > { %v372_v19 = vsel %vm370_vm1, %v365_v16, %v363_v15 }
 0x128   : > { %v377_v21 = vsel %vm375_vm2, %v372_v19, 0.0 }
 0x129   : > { %v378_v22 = vadd.f32 %v377_v21, %v376_v20 }
 0x12b   : > { %379 = vadd.xlane.f32.xlu1 %v378_v22 }
 0x1b8   : > { %v380_v24 = vpop.xlane.xlu1 %379 }
 0x1b9   : > { %v389_v25 = vsub.f32 %v380_v24, %v387_v18 }
 0x1bb   : > { %v390_v26 = vmul.f32 0.003921569, %v389_v25 }
 0x1bd   : > { %v391_v27 = vmax.f32 %v390_v26, 0.0 }
 0x1bf   : > { %766 = vrsqrt.f32 %v391_v27  ;;  %vm394_vm3 = vcmp.eq.f32.partialorder %v391_v27, inf  ;;  %v397_v30 = vand.u32 2147483648, %v391_v27  ;;  %vm396_vm4 = vcmp.eq.f32.partialorder %v391_v27, 0.0 }
 0x1c9   : > { %v767_v28 = vpop.eup %766 }
 0x1ca   : > { %v393_v29 = vmul.f32 %v767_v28, %v391_v27 }
 0x1cc   : > { %v395_v31 = vsel %vm394_vm3, %v391_v27, %v393_v29 }
 0x1cd   : > { %v398_v32 = vsel %vm396_vm4, %v397_v30, %v395_v31 }
 0x1ce   : > { %v399_v33 = vadd.f32 1e-05, %v398_v32 }
 0x1d0   : > { %768 = vrcp.f32 %v399_v33 }
 0x1da   : > { %v769_v38 = vpop.eup %768 }
 0x1db   : > { %v412_v39 = vrot.slane %v769_v38, %v411_v37 }
 0x1dd   : > { %v420_v41 = vrot.slane %v412_v39, %v411_v37  ;;  %v413_v42 = vcombine.high %v412_v39, %v412_v39 }
 0x1df   : > { %v430_v44 = vmul.f32 %v420_v41, %v401_v40  ;;  %v427_v45 = vrot.slane %v413_v42, %v411_v37 }
 0x1e1   : > { %438 = vperm.xlu1 %762, %v430_v44   ;;  %v431_v47 = vmul.f32 %v427_v45, %v402_v43  ;;  %v432_v48 = vmul.f32 %v430_v44, %v1211_v54 }
 0x1e3   : > { %447 = vperm.xlu0 %763, %v431_v47   ;;  %v434_v49 = vsub.f32 %v403_v46, %v432_v48  ;;  %v433_v50 = vmul.f32 %v431_v47, %v361_v63 }
 0x1e5   : > { %460 = vperm.xlu1 %762, %v434_v49   ;;  %v435_v52 = vsub.f32 %v404_v51, %v433_v50 }
 0x1e9   : > { %469 = vperm.xlu1 %762, %v435_v52  }
 0x260   : > { %v439_v55 = vpop.permute.xlu1 %438 }
 0x261   : > { %v444_v56 = vrot.slane %v439_v55, %v443_v53 }
 0x262   : > { %v448_v57 = vpop.permute.xlu0 %447 }
 0x263   : > { %v453_v58 = vrot.slane %v448_v57, %v443_v53  ;;  %v454_v60 = vmul.f32 %v444_v56, %v1213_v2  ;;  %v455_v61 = vmul.f32 %v444_v56, %v1218_v6 }
 0x264   : > { %v461_v59 = vpop.permute.xlu1 %460 }
 0x265   : > { %v466_v62 = vrot.slane %v461_v59, %v443_v53  ;;  %v456_v63 = vmul.f32 %v453_v58, %v1216_v5  ;;  %v457_v7 = vmul.f32 %v453_v58, %v1222_v10 }
 0x267   : > { %v476_v54 = vadd.f32 %v466_v62, %v454_v60  ;;  %v477_v3 = vadd.f32 %v466_v62, %v455_v61 }
 0x268   : > { %v470_v4 = vpop.permute.xlu1 %469 }
 0x269   : > { %v681_v8 = vmul.f32 -1.442695, %v476_v54  ;;  %v682_v9 = vmul.f32 -1.442695, %v477_v3  ;;  %v475_v14 = vrot.slane %v470_v4, %v443_v53 }
 0x26b   : > { %770 = vpow2.f32 %v681_v8  ;;  %v478_v11 = vadd.f32 %v475_v14, %v456_v63  ;;  %v479_v12 = vadd.f32 %v475_v14, %v457_v7 }
 0x26c   : > { %772 = vpow2.f32 %v682_v9 }
 0x26d   : > { %v683_v13 = vmul.f32 -1.442695, %v478_v11  ;;  %v684_v15 = vmul.f32 -1.442695, %v479_v12 }
 0x26f   : > { %774 = vpow2.f32 %v683_v13 }
 0x270   : > { %776 = vpow2.f32 %v684_v15 }
 0x275   : > { %v771_v2 = vpop.eup %770 }
 0x276   : > { %v773_v6 = vpop.eup %772  ;;  %v492_v16 = vadd.f32 1.0, %v771_v2 }
 0x277   : > { %v493_v17 = vadd.f32 1.0, %v773_v6 }
 0x278   : > { %778 = vrcp.f32 %v492_v16 }
 0x279   : > { %v775_v5 = vpop.eup %774  ;;  %780 = vrcp.f32 %v493_v17 }
 0x27a   : > { %v777_v10 = vpop.eup %776  ;;  %v494_v18 = vadd.f32 1.0, %v775_v5 }
 0x27b   : > { %v495_v19 = vadd.f32 1.0, %v777_v10 }
 0x27c   : > { %782 = vrcp.f32 %v494_v18 }
 0x27d   : > { %784 = vrcp.f32 %v495_v19 }
 0x282   : > { %v779_v20 = vpop.eup %778 }
 0x283   : > { %v781_v21 = vpop.eup %780  ;;  %v507_v22 = vrot.slane %v779_v20, %v443_v53 }
 0x284   : > { %v511_v23 = vrot.slane %v781_v21, %v443_v53 }
 0x286   : > { %v783_v24 = vpop.eup %782  ;;  %v524_v25 = vcombine.low %v507_v22, %v511_v23 }
 0x287   : > { %v785_v26 = vpop.eup %784  ;;  %v515_v27 = vrot.slane %v783_v24, %v443_v53 }
 0x288   : > { %v519_v28 = vrot.slane %v785_v26, %v443_v53  ;;  %v528_v29 = vmul.f32 %v524_v25, %v1186_v0 }
 0x28a   : > { %v525_v30 = vcombine.low %v515_v27, %v519_v28  ;;  %530 = vst [vmem:[%s266_s9] sm:$0xff] %v528_v29 }
 0x28c   : > { %v529_v31 = vmul.f32 %v525_v30, %v1188_v1 }
 0x28e   : > { %531 = vst [vmem:[%s266_s9 + $0x8] sm:$0xff] %v529_v31 }
 0x28f   : > { %889 = shalt.err (!%p886_p9)
}
 0x290   : > { %s890_s11 = scalar_lea.hbm %s1249_s19, 256  ;;  %s894_s1 = scalar_lea.hbm %s1298_s3, 2048 }
 0x291   : > { %p891_p7 = scmp.ne.s32.totalorder %s1249_s19, %s890_s11  ;;  %p895_p3 = scmp.lt.u32.totalorder %s1249_s19, %s1298_s3 }
 0x292   : > { %p896_p0 = scmp.lt.u32.totalorder %s894_s1, %s890_s11  ;;  %p898_p12 = scmp.lt.u32.totalorder %s890_s11, %s1249_s19 }
 0x293   : > { %p892_p11 = pnand %p891_p7, %p1315_p4 }
 0x294   : > { %p897_p13 = por %p896_p0, %p895_p3 }
 0x295   : > { %p893_p1 = pneg %p892_p11 }
 0x296   : > { %p899_p6 = por %p898_p12, %p897_p13 }
 0x298   : > { %p900_p10 = pnand %p899_p6, %p893_p1 }
 0x29a   : > { %903 = shalt.err (!%p900_p10)
}
 0x29b   : > { %s959_s4 = smov 128   ;;  %s960_s22 = smov 8  }
 0x29c   : > { %703 = dma.vmem_to_hbm [thread:$0]  (%p1315_p4), %s1251_s17, 256, %s1249_s19, %s533_s29, %s959_s4, %s959_s4, %s960_s22  }
 0x29d PF: > { %p720_p2 = scmp.ge.s32.totalorder %s946_s15, 2  ;;  %s562_s6 = sand.u32 1, %s934_s12  }
 0x29e   : > { %p1316_p5 = scmp.ne.s32.totalorder %s1306_s24, 0  ;;  %s563_s9 = scalar_lea.sflag [#allocation4], %s562_s6 }
 0x2a0   : > { %p716_p8 = pnand %p720_p2, %p1316_p5 }
 0x2a2   : > { %929 = dma.done.wait (!%p716_p8), %s563_s9, 256  }
 0x2a3   : > { %931 = vsyncadd (!%p716_p8), %s563_s9, 4294967040  ;;  %p19_p9 = scmp.ge.s32.totalorder %s1006_s18, 10   ;;  %s1317_s12 = smov %s938_s13 }
 0x2a4   : > { %s1318_s13 = smov %s942_s14  ;;  %s1319_s14 = smov %s1018_s21 }
 0x2a5   : > { %s1320_s15 = smov %s1006_s18  ;;  %21 = sbr.rel (!%p19_p9) target bundleno = 9 (0x9), region = 101 }
 0x2ac   :  { %568 = vsyncpa [#allocation3], 1 }
 0x2ad   :  { %570 = vsyncpa [#allocation3 + $0x1], 1 }
 0x2ae   :  { %571 = vsyncpa [#allocation6], 1 }
 0x2af   :  { %573 = vsyncpa [#allocation6 + $0x1], 1 }
 0x2b0   :  { %574 = vsyncpa [#allocation4], 1 }
 0x2b1   :  { %576 = vsyncpa [#allocation4 + $0x1], 1 }

</bundles_post_ra>
